<compile_context>
chip_gen: v5e
topology: v5e:2x2
jax: 0.10.0
libtpu: 0.0.40
codegen_flags: <defaults>
</compile_context>

<pallas_src>
import functools

import jax
import jax.numpy as jnp
import numpy as np
from jax.experimental import pallas as pl
from jax.experimental.pallas import tpu as pltpu

NEG_SLOPE = 0.01      # nn.LeakyReLU default
LN_EPS = 1e-5         # nn.LayerNorm default


def _leaky_relu(x):
    return jnp.where(x > 0, x, NEG_SLOPE * x)


def _round_up(v, m):
    return ((v + m - 1) // m) * m


def _vmem_cap_bytes():
    """Generation-aware usable VMEM cap (~85% of physical; fallback = v7x 64 MiB)."""
    try:
        info = pltpu.get_tpu_info()
        cap = int(getattr(info, "vmem_capacity_bytes", 64 << 20))
    except Exception:
        cap = 64 << 20
    return max(32 << 20, (cap * 85) // 100)


# ---------------------------------------------------------------------------
# Kernels
# ---------------------------------------------------------------------------

def highway_kernel_resident(x_ref,
                            b1g_ref,                             # SMEM scalar: gate.linear1.bias (1,1)
                            w1gc_ref, w2g_ref, b2g_ref,          # gate FeedForward(d_model, 1)
                            w1t_ref, b1_ref, w2t_ref, b2_ref,    # layer FeedForward(d_model, d_hidden)
                            gamma_ref, beta_ref,                 # LayerNorm(d_model)
                            o_ref,
                            *, compute_dtype):
    x = x_ref[...].astype(jnp.float32)          # (tm, D)
    x_cd = x.astype(compute_dtype)

    # ---- gate: sigmoid(linear2(leaky_relu(linear1(x)))), hidden width 1 ----
    # linear1 runs on the MXU: the weight is column 0 of a lane-padded (D, 128) slab,
    # which frees a full VPU pass + XLU lane reduce per step.
    hg = jnp.dot(x_cd, w1gc_ref[...], preferred_element_type=jnp.float32)   # (tm, 128)
    h1 = hg[:, 0:1] + b1g_ref[0, 0]                                         # (tm, 1)
    g = jax.nn.sigmoid(_leaky_relu(h1) * w2g_ref[...] + b2g_ref[...])       # (tm, D)

    # ---- inner layer: FeedForward(d_model, d_hidden), MXU, fp32 accumulation ----
    h = jnp.dot(x_cd, w1t_ref[...], preferred_element_type=jnp.float32) + b1_ref[...]
    h = _leaky_relu(h)
    y = jnp.dot(h.astype(compute_dtype), w2t_ref[...],
                preferred_element_type=jnp.float32) + b2_ref[...]           # (tm, D)

    # ---- highway mix (dropout is identity in eval mode) + LayerNorm ----
    # TODO(synk): training-mode dropout (inverted dropout with PRNG) not implemented.
    z = x * g + y * (1.0 - g)
    mean = jnp.mean(z, axis=-1, keepdims=True)
    var = jnp.mean((z - mean) ** 2, axis=-1, keepdims=True)
    zn = (z - mean) * jax.lax.rsqrt(var + LN_EPS)
    o_ref[...] = (zn * gamma_ref[...] + beta_ref[...]).astype(o_ref.dtype)


def highway_kernel_stream(x_ref,
                          b1g_ref,
                          w1gc_ref, w2g_ref, b2g_ref,
                          w1t_ref, b1_ref, w2t_ref, b2_ref,      # streamed d_hidden blocks
                          gamma_ref, beta_ref,
                          o_ref,
                          acc_ref,                                # fp32 (tm, D) accumulator
                          *, compute_dtype):
    k = pl.program_id(1)

    x_cd = x_ref[...].astype(compute_dtype)

    @pl.when(k == 0)
    def _():
        acc_ref[...] = jnp.zeros_like(acc_ref)

    # one d_hidden block: h_k = leaky_relu(x @ W1[:, blk] + b1[blk]); acc += h_k @ W2[blk, :]
    h = jnp.dot(x_cd, w1t_ref[...], preferred_element_type=jnp.float32) + b1_ref[...]
    h = _leaky_relu(h)
    acc_ref[...] += jnp.dot(h.astype(compute_dtype), w2t_ref[...],
                            preferred_element_type=jnp.float32)

    @pl.when(k == pl.num_programs(1) - 1)
    def _():
        x = x_ref[...].astype(jnp.float32)
        y = acc_ref[...] + b2_ref[...]

        hg = jnp.dot(x_cd, w1gc_ref[...], preferred_element_type=jnp.float32)
        h1 = hg[:, 0:1] + b1g_ref[0, 0]
        g = jax.nn.sigmoid(_leaky_relu(h1) * w2g_ref[...] + b2g_ref[...])

        z = x * g + y * (1.0 - g)
        mean = jnp.mean(z, axis=-1, keepdims=True)
        var = jnp.mean((z - mean) ** 2, axis=-1, keepdims=True)
        zn = (z - mean) * jax.lax.rsqrt(var + LN_EPS)
        o_ref[...] = (zn * gamma_ref[...] + beta_ref[...]).astype(o_ref.dtype)


# ---------------------------------------------------------------------------
# Wrapper
# ---------------------------------------------------------------------------

def highway_block(x, params, *, matmul_dtype=jnp.bfloat16, out_dtype=None,
                  force_stream=False, th=None, step_target_bytes=2 << 20):
    """x: [B, S, d_model] float32. params: dict of weights (see init_params).

    out_dtype: set to jnp.bfloat16 to halve HBM writeback when the caller accepts it.
    force_stream / th: force the d_hidden-streaming path (mainly for testing).
    """
    B, S, D = x.shape
    N = B * S
    H = params["w1t"].shape[1]
    if out_dtype is None:
        out_dtype = x.dtype

    w_item = jnp.dtype(matmul_dtype).itemsize
    cd_item = w_item
    out_item = jnp.dtype(out_dtype).itemsize
    cap = _vmem_cap_bytes()

    # Fixed VMEM residents common to both paths: gate slab (D,128) + five (1,D)
    # fp32 vectors (sublane-padded) + headroom.
    aux_bytes = D * 128 * w_item + 5 * 8 * _round_up(D, 128) * 4 + (2 << 20)
    # Resident-path weights: W1^T (D,H) + W2^T (H,D) in matmul dtype, b1 (1,H) fp32.
    resident_weight_bytes = 2 * D * H * w_item + 8 * _round_up(H, 128) * 4

    # Stream the d_hidden axis when full weight residency would eat more than half
    # the usable VMEM (e.g. large D*H on v7x's 64 MiB part).
    use_stream = bool(force_stream) or (resident_weight_bytes + aux_bytes > cap // 2)

    def per_step_resident(tm):
        return (2 * tm * D * 4                     # double-buffered x input tiles (f32)
                + 2 * tm * D * out_item            # double-buffered output tiles
                + tm * D * (4 + cd_item + 12)      # x f32 copy, x cast, g, y, z
                + tm * H * (4 + cd_item)           # h f32 + bf16 cast
                + tm * 128 * 4)                    # gate matmul slab

    def choose_tm(per_step_fn, budget):
        # byte-targeted row tile (~step_target_bytes of x rows per grid step)
        tm = max(8, int(step_target_bytes) // (D * 4))
        tm = min(tm, _round_up(N, 8))
        tm = max(8, (tm // 8) * 8)
        # shrink until the per-step working set fits the remaining VMEM budget
        while tm > 8 and per_step_fn(tm) > budget:
            tm = max(8, ((tm // 2) // 8) * 8)
        # v7x has 2 TensorCores: keep >= 2 steps on the 'parallel' row axis when the
        # problem is big enough, so one core does not idle.
        if N >= 1024 and (N + tm - 1) // tm < 2:
            tm = max(8, _round_up((N + 1) // 2, 8))
        return tm

    xf = x.reshape(N, D)

    # Matmul weights cast once here (halves their VMEM/HBM footprint for bf16).
    w1t = params["w1t"].astype(matmul_dtype)
    w2t = params["w2t"].astype(matmul_dtype)
    b1 = params["b1"]
    # gate.linear1 weight packed into column 0 of a lane-padded slab -> MXU matvec.
    w1g_col = jnp.zeros((D, 128), matmul_dtype).at[:, 0].set(
        params["w1g"][0].astype(matmul_dtype))

    vmem_resident = pl.BlockSpec(memory_space=pltpu.MemorySpace.VMEM)
    smem_scalar = pl.BlockSpec(memory_space=pltpu.MemorySpace.SMEM)

    if not use_stream:
        # ------------------------- resident-weight path -------------------------
        budget = max(8 << 20, cap - resident_weight_bytes - aux_bytes)
        tm = choose_tm(per_step_resident, budget)

        pad = (-N) % tm
        xp = jnp.pad(xf, ((0, pad), (0, 0))) if pad else xf
        Np = N + pad

        vmem_limit = int(min(cap, max(32 << 20,
                                      resident_weight_bytes + aux_bytes
                                      + per_step_resident(tm))))

        out = pl.pallas_call(
            functools.partial(highway_kernel_resident, compute_dtype=matmul_dtype),
            out_shape=jax.ShapeDtypeStruct((Np, D), out_dtype),
            grid_spec=pltpu.PrefetchScalarGridSpec(
                num_scalar_prefetch=0,
                grid=(Np // tm,),
                in_specs=[
                    pl.BlockSpec((tm, D), lambda i: (i, 0)),   # x rows (pipelined)
                    smem_scalar,                               # gate.linear1.bias (1,1)
                    vmem_resident,                             # gate.linear1 weight slab (D,128)
                    vmem_resident,                             # gate.linear2.weight^T (1,D)
                    vmem_resident,                             # gate.linear2.bias (1,D)
                    vmem_resident,                             # layer.linear1.weight^T (D,H)
                    vmem_resident,                             # layer.linear1.bias (1,H)
                    vmem_resident,                             # layer.linear2.weight^T (H,D)
                    vmem_resident,                             # layer.linear2.bias (1,D)
                    vmem_resident,                             # layernorm.weight (1,D)
                    vmem_resident,                             # layernorm.bias (1,D)
                ],
                out_specs=pl.BlockSpec((tm, D), lambda i: (i, 0)),
            ),
            compiler_params=pltpu.CompilerParams(
                dimension_semantics=("parallel",),
                vmem_limit_bytes=vmem_limit,
            ),
        )(xp, params["b1g"], w1g_col, params["w2g"], params["b2g"],
          w1t, b1, w2t, params["b2"], params["gamma"], params["beta"])

    else:
        # ------------------- d_hidden-streaming path (large D*H) -------------------
        if th is None:
            th = min(512, _round_up(H, 128))
        th = min(_round_up(int(th), 128), _round_up(H, 128))
        Hp = _round_up(H, th)
        if Hp != H:
            # zero-padded hidden units contribute exactly 0 (zero w1/b1 -> h=0, zero w2 rows)
            w1t = jnp.pad(w1t, ((0, 0), (0, Hp - H)))
            b1 = jnp.pad(b1, ((0, 0), (0, Hp - H)))
            w2t = jnp.pad(w2t, ((0, Hp - H), (0, 0)))

        def per_step_stream(tm):
            return (2 * tm * D * 4
                    + 2 * tm * D * out_item
                    + tm * D * 4                                  # fp32 accumulator scratch
                    + tm * D * (4 + cd_item + 8)                  # x f32, x cast, g, z
                    + tm * th * (4 + cd_item)                     # h block f32 + cast
                    + tm * 128 * 4                                # gate matmul slab
                    + 2 * (2 * D * th * w_item + 8 * th * 4))     # double-buffered W1/W2/b1 blocks

        budget = max(8 << 20, cap - aux_bytes)
        tm = choose_tm(per_step_stream, budget)

        pad = (-N) % tm
        xp = jnp.pad(xf, ((0, pad), (0, 0))) if pad else xf
        Np = N + pad

        vmem_limit = int(min(cap, max(32 << 20, aux_bytes + per_step_stream(tm))))

        out = pl.pallas_call(
            functools.partial(highway_kernel_stream, compute_dtype=matmul_dtype),
            out_shape=jax.ShapeDtypeStruct((Np, D), out_dtype),
            grid_spec=pltpu.PrefetchScalarGridSpec(
                num_scalar_prefetch=0,
                grid=(Np // tm, Hp // th),
                in_specs=[
                    pl.BlockSpec((tm, D), lambda i, k: (i, 0)),   # x rows (resident across k)
                    smem_scalar,                                  # gate.linear1.bias (1,1)
                    vmem_resident,                                # gate weight slab (D,128)
                    vmem_resident,                                # gate.linear2.weight^T (1,D)
                    vmem_resident,                                # gate.linear2.bias (1,D)
                    pl.BlockSpec((D, th), lambda i, k: (0, k)),   # W1^T block (streamed over H)
                    pl.BlockSpec((1, th), lambda i, k: (0, k)),   # b1 block
                    pl.BlockSpec((th, D), lambda i, k: (k, 0)),   # W2^T block (streamed over H)
                    vmem_resident,                                # layer.linear2.bias (1,D)
                    vmem_resident,                                # layernorm.weight (1,D)
                    vmem_resident,                                # layernorm.bias (1,D)
                ],
                out_specs=pl.BlockSpec((tm, D), lambda i, k: (i, 0)),
                scratch_shapes=[pltpu.VMEM((tm, D), jnp.float32)],
            ),
            compiler_params=pltpu.CompilerParams(
                dimension_semantics=("parallel", "arbitrary"),
                vmem_limit_bytes=vmem_limit,
            ),
        )(xp, params["b1g"], w1g_col, params["w2g"], params["b2g"],
          w1t, b1, w2t, params["b2"], params["gamma"], params["beta"])

    return out[:N].reshape(B, S, D)


# ---------------------------------------------------------------------------
# Params / reference
# ---------------------------------------------------------------------------

def init_params(key, d_model, d_hidden):
    ks = jax.random.split(key, 8)
    s = 0.1
    return {
        # gate: FeedForward(d_model, 1)
        "w1g": (s * jax.random.normal(ks[0], (1, d_model))).astype(jnp.float32),
        "b1g": (s * jax.random.normal(ks[1], (1, 1))).astype(jnp.float32),
        "w2g": (s * jax.random.normal(ks[2], (1, d_model))).astype(jnp.float32),
        "b2g": (s * jax.random.normal(ks[3], (1, d_model))).astype(jnp.float32),
        # inner layer: FeedForward(d_model, d_hidden) — stored pre-transposed
        "w1t": (s * jax.random.normal(ks[4], (d_model, d_hidden))).astype(jnp.float32),
        "b1": (s * jax.random.normal(ks[5], (1, d_hidden))).astype(jnp.float32),
        "w2t": (s * jax.random.normal(ks[6], (d_hidden, d_model))).astype(jnp.float32),
        "b2": (s * jax.random.normal(ks[7], (1, d_model))).astype(jnp.float32),
        # LayerNorm
        "gamma": jnp.ones((1, d_model), jnp.float32),
        "beta": jnp.zeros((1, d_model), jnp.float32),
    }


def highway_block_ref(x, p):
    """Pure-JAX reference (eval-mode dropout), fp32 throughout."""
    h1 = jnp.sum(x * p["w1g"][0], axis=-1, keepdims=True) + p["b1g"][0, 0]
    g = jax.nn.sigmoid(_leaky_relu(h1) * p["w2g"][0] + p["b2g"][0])
    h = _leaky_relu(x @ p["w1t"] + p["b1"][0])
    y = h @ p["w2t"] + p["b2"][0]
    z = x * g + y * (1.0 - g)
    mean = jnp.mean(z, axis=-1, keepdims=True)
    var = jnp.mean((z - mean) ** 2, axis=-1, keepdims=True)
    return (z - mean) / jnp.sqrt(var + LN_EPS) * p["gamma"][0] + p["beta"][0]


if __name__ == "__main__":
    # Small but lane-friendly shapes: d_model = 128 keeps stores lane-dense.
    B, S, d_model, d_hidden = 2, 8, 128, 256
    key = jax.random.PRNGKey(0)
    kx, kp = jax.random.split(key)
    x = jax.random.normal(kx, (B, S, d_model), dtype=jnp.float32)
    params = init_params(kp, d_model, d_hidden)

    ref = highway_block_ref(x, params)

    # 1) resident path, fp32 matmuls: tight tolerance.
    out_f32 = jax.block_until_ready(highway_block(x, params, matmul_dtype=jnp.float32))
    np.testing.assert_allclose(np.asarray(out_f32), np.asarray(ref), atol=1e-4, rtol=1e-4)

    # 2) resident path, default bf16 matmuls (fp32 accumulation): loose tolerance.
    out_bf16 = jax.block_until_ready(highway_block(x, params))
    np.testing.assert_allclose(np.asarray(out_bf16), np.asarray(ref), atol=5e-2, rtol=5e-2)

    # 3) d_hidden-streaming path (forced, 2 hidden blocks), fp32 matmuls: tight tolerance.
    out_stream = jax.block_until_ready(
        highway_block(x, params, matmul_dtype=jnp.float32, force_stream=True, th=128))
    np.testing.assert_allclose(np.asarray(out_stream), np.asarray(ref), atol=1e-4, rtol=1e-4)

    # 4) bf16 output path (halved writeback): loose tolerance.
    out_bf16_out = jax.block_until_ready(
        highway_block(x, params, out_dtype=jnp.bfloat16))
    np.testing.assert_allclose(np.asarray(out_bf16_out.astype(jnp.float32)),
                               np.asarray(ref), atol=5e-2, rtol=5e-2)

    print("KERNEL_OK")
</pallas_src>

<mosaic_0001>
module attributes {stable_mosaic.version = 11 : i64} {
  func.func @highway_kernel_resident(%arg0: i32, %arg1: memref<16x128xf32, #tpu.memory_space<vmem>>, %arg2: memref<1x1xf32, #tpu.memory_space<smem>>, %arg3: memref<128x128xf32, #tpu.memory_space<vmem>>, %arg4: memref<1x128xf32, #tpu.memory_space<vmem>>, %arg5: memref<1x128xf32, #tpu.memory_space<vmem>>, %arg6: memref<128x256xf32, #tpu.memory_space<vmem>>, %arg7: memref<1x256xf32, #tpu.memory_space<vmem>>, %arg8: memref<256x128xf32, #tpu.memory_space<vmem>>, %arg9: memref<1x128xf32, #tpu.memory_space<vmem>>, %arg10: memref<1x128xf32, #tpu.memory_space<vmem>>, %arg11: memref<1x128xf32, #tpu.memory_space<vmem>>, %arg12: memref<16x128xf32, #tpu.memory_space<vmem>>) attributes {dimension_semantics = [#tpu.dimension_semantics<parallel>], iteration_bounds = array<i64: 1>, scalar_prefetch = 0 : i64, scratch_operands = 0 : i64, tpu.core_type = #tpu.core_type<tc>, window_params = [{transform_indices = @transform_0, window_bounds = array<i64: 16, 128>}, {transform_indices = @transform_1, window_bounds = array<i64: 1, 1>}, {pipeline_mode = #tpu.pipeline_mode<synchronous>, transform_indices = @transform_2, window_bounds = array<i64: 128, 128>}, {pipeline_mode = #tpu.pipeline_mode<synchronous>, transform_indices = @transform_3, window_bounds = array<i64: 1, 128>}, {pipeline_mode = #tpu.pipeline_mode<synchronous>, transform_indices = @transform_4, window_bounds = array<i64: 1, 128>}, {pipeline_mode = #tpu.pipeline_mode<synchronous>, transform_indices = @transform_5, window_bounds = array<i64: 128, 256>}, {pipeline_mode = #tpu.pipeline_mode<synchronous>, transform_indices = @transform_6, window_bounds = array<i64: 1, 256>}, {pipeline_mode = #tpu.pipeline_mode<synchronous>, transform_indices = @transform_7, window_bounds = array<i64: 256, 128>}, {pipeline_mode = #tpu.pipeline_mode<synchronous>, transform_indices = @transform_8, window_bounds = array<i64: 1, 128>}, {pipeline_mode = #tpu.pipeline_mode<synchronous>, transform_indices = @transform_9, window_bounds = array<i64: 1, 128>}, {pipeline_mode = #tpu.pipeline_mode<synchronous>, transform_indices = @transform_10, window_bounds = array<i64: 1, 128>}, {transform_indices = @transform_11, window_bounds = array<i64: 16, 128>}]} {
    %c0 = arith.constant 0 : index
    %c0_0 = arith.constant 0 : index
    %0 = vector.load %arg1[%c0, %c0_0] : memref<16x128xf32, #tpu.memory_space<vmem>>, vector<16x128xf32>
    %c0_1 = arith.constant 0 : index
    %c0_2 = arith.constant 0 : index
    %1 = vector.load %arg3[%c0_1, %c0_2] : memref<128x128xf32, #tpu.memory_space<vmem>>, vector<128x128xf32>
    %cst = arith.constant dense<0.000000e+00> : vector<16x128xf32>
    %2 = tpu.matmul %0, %1, %cst {dimension_numbers = #tpu.dot_dimension_numbers<[1], [0], [0], [1], [0, 0, 1, 1], [], []>} : vector<16x128xf32>, vector<128x128xf32>, vector<16x128xf32> -> vector<16x128xf32>
    %3 = vector.extract_strided_slice %2 {offsets = [0, 0], sizes = [16, 1], strides = [1, 1]} : vector<16x128xf32> to vector<16x1xf32>
    %c0_3 = arith.constant 0 : index
    %c0_4 = arith.constant 0 : index
    %4 = memref.load %arg2[%c0_3, %c0_4] : memref<1x1xf32, #tpu.memory_space<smem>>
    %5 = vector.broadcast %4 : f32 to vector<16x1xf32>
    %6 = arith.addf %3, %5 : vector<16x1xf32>
    %cst_5 = arith.constant 0.000000e+00 : f32
    %7 = vector.broadcast %cst_5 : f32 to vector<16x1xf32>
    %8 = arith.cmpf ogt, %6, %7 : vector<16x1xf32>
    %cst_6 = arith.constant 0.00999999977 : f32
    %9 = vector.broadcast %cst_6 : f32 to vector<16x1xf32>
    %10 = arith.mulf %9, %6 : vector<16x1xf32>
    %11 = arith.select %8, %6, %10 : vector<16x1xi1>, vector<16x1xf32>
    %c0_7 = arith.constant 0 : index
    %c0_8 = arith.constant 0 : index
    %12 = vector.load %arg4[%c0_7, %c0_8] : memref<1x128xf32, #tpu.memory_space<vmem>>, vector<1x128xf32>
    %13 = vector.broadcast %11 : vector<16x1xf32> to vector<16x128xf32>
    %14 = vector.broadcast %12 : vector<1x128xf32> to vector<16x128xf32>
    %15 = arith.mulf %13, %14 : vector<16x128xf32>
    %c0_9 = arith.constant 0 : index
    %c0_10 = arith.constant 0 : index
    %16 = vector.load %arg5[%c0_9, %c0_10] : memref<1x128xf32, #tpu.memory_space<vmem>>, vector<1x128xf32>
    %17 = vector.broadcast %16 : vector<1x128xf32> to vector<16x128xf32>
    %18 = arith.addf %15, %17 : vector<16x128xf32>
    %19 = arith.negf %18 : vector<16x128xf32>
    %20 = math.exp %19 : vector<16x128xf32>
    %cst_11 = arith.constant 1.000000e+00 : f32
    %21 = vector.broadcast %cst_11 : f32 to vector<16x128xf32>
    %22 = arith.addf %21, %20 : vector<16x128xf32>
    %23 = arith.divf %21, %22 : vector<16x128xf32>
    %c0_12 = arith.constant 0 : index
    %c0_13 = arith.constant 0 : index
    %24 = vector.load %arg6[%c0_12, %c0_13] : memref<128x256xf32, #tpu.memory_space<vmem>>, vector<128x256xf32>
    %cst_14 = arith.constant dense<0.000000e+00> : vector<16x256xf32>
    %25 = tpu.matmul %0, %24, %cst_14 {dimension_numbers = #tpu.dot_dimension_numbers<[1], [0], [0], [1], [0, 0, 1, 1], [], []>} : vector<16x128xf32>, vector<128x256xf32>, vector<16x256xf32> -> vector<16x256xf32>
    %c0_15 = arith.constant 0 : index
    %c0_16 = arith.constant 0 : index
    %26 = vector.load %arg7[%c0_15, %c0_16] : memref<1x256xf32, #tpu.memory_space<vmem>>, vector<1x256xf32>
    %27 = vector.broadcast %26 : vector<1x256xf32> to vector<16x256xf32>
    %28 = arith.addf %25, %27 : vector<16x256xf32>
    %cst_17 = arith.constant 0.000000e+00 : f32
    %29 = vector.broadcast %cst_17 : f32 to vector<16x256xf32>
    %30 = arith.cmpf ogt, %28, %29 : vector<16x256xf32>
    %cst_18 = arith.constant 0.00999999977 : f32
    %31 = vector.broadcast %cst_18 : f32 to vector<16x256xf32>
    %32 = arith.mulf %31, %28 : vector<16x256xf32>
    %33 = arith.select %30, %28, %32 : vector<16x256xi1>, vector<16x256xf32>
    %c0_19 = arith.constant 0 : index
    %c0_20 = arith.constant 0 : index
    %34 = vector.load %arg8[%c0_19, %c0_20] : memref<256x128xf32, #tpu.memory_space<vmem>>, vector<256x128xf32>
    %cst_21 = arith.constant dense<0.000000e+00> : vector<16x128xf32>
    %35 = tpu.matmul %33, %34, %cst_21 {dimension_numbers = #tpu.dot_dimension_numbers<[1], [0], [0], [1], [0, 0, 1, 1], [], []>} : vector<16x256xf32>, vector<256x128xf32>, vector<16x128xf32> -> vector<16x128xf32>
    %c0_22 = arith.constant 0 : index
    %c0_23 = arith.constant 0 : index
    %36 = vector.load %arg9[%c0_22, %c0_23] : memref<1x128xf32, #tpu.memory_space<vmem>>, vector<1x128xf32>
    %37 = vector.broadcast %36 : vector<1x128xf32> to vector<16x128xf32>
    %38 = arith.addf %35, %37 : vector<16x128xf32>
    %39 = arith.mulf %0, %23 : vector<16x128xf32>
    %cst_24 = arith.constant 1.000000e+00 : f32
    %40 = vector.broadcast %cst_24 : f32 to vector<16x128xf32>
    %41 = arith.subf %40, %23 : vector<16x128xf32>
    %42 = arith.mulf %38, %41 : vector<16x128xf32>
    %43 = arith.addf %39, %42 : vector<16x128xf32>
    %cst_25 = arith.constant dense<0.000000e+00> : vector<16xf32>
    %44 = vector.multi_reduction <add>, %43, %cst_25 [1] : vector<16x128xf32> to vector<16xf32>
    %45 = vector.shape_cast %44 : vector<16xf32> to vector<16x1xf32>
    %cst_26 = arith.constant 1.280000e+02 : f32
    %46 = vector.broadcast %cst_26 : f32 to vector<16x1xf32>
    %47 = arith.divf %45, %46 : vector<16x1xf32>
    %48 = vector.broadcast %47 : vector<16x1xf32> to vector<16x128xf32>
    %49 = arith.subf %43, %48 : vector<16x128xf32>
    %50 = arith.mulf %49, %49 : vector<16x128xf32>
    %cst_27 = arith.constant dense<0.000000e+00> : vector<16xf32>
    %51 = vector.multi_reduction <add>, %50, %cst_27 [1] : vector<16x128xf32> to vector<16xf32>
    %52 = vector.shape_cast %51 : vector<16xf32> to vector<16x1xf32>
    %cst_28 = arith.constant 1.280000e+02 : f32
    %53 = vector.broadcast %cst_28 : f32 to vector<16x1xf32>
    %54 = arith.divf %52, %53 : vector<16x1xf32>
    %55 = vector.broadcast %47 : vector<16x1xf32> to vector<16x128xf32>
    %56 = arith.subf %43, %55 : vector<16x128xf32>
    %cst_29 = arith.constant 9.99999974E-6 : f32
    %57 = vector.broadcast %cst_29 : f32 to vector<16x1xf32>
    %58 = arith.addf %54, %57 : vector<16x1xf32>
    %59 = math.rsqrt %58 : vector<16x1xf32>
    %60 = vector.broadcast %59 : vector<16x1xf32> to vector<16x128xf32>
    %61 = arith.mulf %56, %60 : vector<16x128xf32>
    %c0_30 = arith.constant 0 : index
    %c0_31 = arith.constant 0 : index
    %62 = vector.load %arg10[%c0_30, %c0_31] : memref<1x128xf32, #tpu.memory_space<vmem>>, vector<1x128xf32>
    %63 = vector.broadcast %62 : vector<1x128xf32> to vector<16x128xf32>
    %64 = arith.mulf %61, %63 : vector<16x128xf32>
    %c0_32 = arith.constant 0 : index
    %c0_33 = arith.constant 0 : index
    %65 = vector.load %arg11[%c0_32, %c0_33] : memref<1x128xf32, #tpu.memory_space<vmem>>, vector<1x128xf32>
    %66 = vector.broadcast %65 : vector<1x128xf32> to vector<16x128xf32>
    %67 = arith.addf %64, %66 : vector<16x128xf32>
    %c0_34 = arith.constant 0 : index
    %c0_35 = arith.constant 0 : index
    %68 = vector.load %arg12[%c0_34, %c0_35] : memref<16x128xf32, #tpu.memory_space<vmem>>, vector<16x128xf32>
    tpu.vector_store %arg12[%c0_34, %c0_35], %67 {strides = array<i32>} : memref<16x128xf32, #tpu.memory_space<vmem>>, vector<16x128xf32>,
    return
  }
  func.func @transform_0(%arg0: i32) -> (i32, i32) {
    %c0_i32 = arith.constant 0 : i32
    %c0_i32_0 = arith.constant 0 : i32
    return %arg0, %c0_i32 : i32, i32
  }
  func.func @transform_1(%arg0: i32) -> (i32, i32) {
    %c0_i32 = arith.constant 0 : i32
    %c0_i32_0 = arith.constant 0 : i32
    %c0_i32_1 = arith.constant 0 : i32
    return %c0_i32, %c0_i32_0 : i32, i32
  }
  func.func @transform_2(%arg0: i32) -> (i32, i32) {
    %c0_i32 = arith.constant 0 : i32
    %c0_i32_0 = arith.constant 0 : i32
    %c0_i32_1 = arith.constant 0 : i32
    return %c0_i32, %c0_i32_0 : i32, i32
  }
  func.func @transform_3(%arg0: i32) -> (i32, i32) {
    %c0_i32 = arith.constant 0 : i32
    %c0_i32_0 = arith.constant 0 : i32
    %c0_i32_1 = arith.constant 0 : i32
    return %c0_i32, %c0_i32_0 : i32, i32
  }
  func.func @transform_4(%arg0: i32) -> (i32, i32) {
    %c0_i32 = arith.constant 0 : i32
    %c0_i32_0 = arith.constant 0 : i32
    %c0_i32_1 = arith.constant 0 : i32
    return %c0_i32, %c0_i32_0 : i32, i32
  }
  func.func @transform_5(%arg0: i32) -> (i32, i32) {
    %c0_i32 = arith.constant 0 : i32
    %c0_i32_0 = arith.constant 0 : i32
    %c0_i32_1 = arith.constant 0 : i32
    return %c0_i32, %c0_i32_0 : i32, i32
  }
  func.func @transform_6(%arg0: i32) -> (i32, i32) {
    %c0_i32 = arith.constant 0 : i32
    %c0_i32_0 = arith.constant 0 : i32
    %c0_i32_1 = arith.constant 0 : i32
    return %c0_i32, %c0_i32_0 : i32, i32
  }
  func.func @transform_7(%arg0: i32) -> (i32, i32) {
    %c0_i32 = arith.constant 0 : i32
    %c0_i32_0 = arith.constant 0 : i32
    %c0_i32_1 = arith.constant 0 : i32
    return %c0_i32, %c0_i32_0 : i32, i32
  }
  func.func @transform_8(%arg0: i32) -> (i32, i32) {
    %c0_i32 = arith.constant 0 : i32
    %c0_i32_0 = arith.constant 0 : i32
    %c0_i32_1 = arith.constant 0 : i32
    return %c0_i32, %c0_i32_0 : i32, i32
  }
  func.func @transform_9(%arg0: i32) -> (i32, i32) {
    %c0_i32 = arith.constant 0 : i32
    %c0_i32_0 = arith.constant 0 : i32
    %c0_i32_1 = arith.constant 0 : i32
    return %c0_i32, %c0_i32_0 : i32, i32
  }
  func.func @transform_10(%arg0: i32) -> (i32, i32) {
    %c0_i32 = arith.constant 0 : i32
    %c0_i32_0 = arith.constant 0 : i32
    %c0_i32_1 = arith.constant 0 : i32
    return %c0_i32, %c0_i32_0 : i32, i32
  }
  func.func @transform_11(%arg0: i32) -> (i32, i32) {
    %c0_i32 = arith.constant 0 : i32
    %c0_i32_0 = arith.constant 0 : i32
    return %arg0, %c0_i32 : i32, i32
  }
}

</mosaic_0001>

<bundles_post_ra>
// kernel: tpu_custom_call.1
= control target key start
LH: loop header
LB: loop body
LE: loop exit
PB: predicated region body
PF: predicated region fallthrough
CT: control target
= control target key end

     0   :  { %17 = vsyncpa [#allocation4], 0  ;;  %s790_s0 = inlined_call_operand.hbm [shape: f32[16,128], index: 0, kind: input, shape index: {}]   ;;  %s791_s1 = inlined_call_operand.<no memory space> [shape: f32[1,1], index: 1, kind: input, shape index: {}]   ;;  %s792_s2 = inlined_call_operand.hbm [shape: f32[128,128], index: 2, kind: input, shape index: {}]   ;;  %s793_s3 = inlined_call_operand.vmem [shape: f32[1,128], index: 3, kind: input, shape index: {}]   ;;  %s794_s4 = inlined_call_operand.vmem [shape: f32[1,128], index: 4, kind: input, shape index: {}]   ;;  %s795_s5 = inlined_call_operand.hbm [shape: f32[128,256], index: 5, kind: input, shape index: {}]   ;;  %s796_s6 = inlined_call_operand.vmem [shape: f32[1,256], index: 6, kind: input, shape index: {}]   ;;  %s797_s7 = inlined_call_operand.hbm [shape: f32[256,128], index: 7, kind: input, shape index: {}]   ;;  %s798_s8 = inlined_call_operand.vmem [shape: f32[1,128], index: 8, kind: input, shape index: {}]   ;;  %s799_s9 = inlined_call_operand.vmem [shape: f32[1,128], index: 9, kind: input, shape index: {}]   ;;  %s800_s10 = inlined_call_operand.vmem [shape: f32[1,128], index: 10, kind: input, shape index: {}]   ;;  %s801_s11 = inlined_call_operand.hbm [shape: f32[16,128], index: 11, kind: output, shape index: {}]  }
   0x1   :  { %18 = vsyncpa [#allocation7], 0 }
   0x2   :  { %19 = vsyncpa [#allocation10], 0 }
   0x3   :  { %20 = vsyncpa [#allocation5], 0  ;;  %s40_s19 = sshll.u32 %s792_s2, 4  ;;  %s659_s20 = smov [#allocation6]   ;;  %s41_s19 = int_to_ptr.hbm [resolvable:$true] %s40_s19 }
   0x4   :  { %s42_s21 = sshll.u32 %s659_s20, 4  ;;  %s25_s24 = sshll.u32 %s790_s0, 4  ;;  %s43_s21 = int_to_ptr.vmem [resolvable:$true] %s42_s21  ;;  %s26_s24 = int_to_ptr.hbm [resolvable:$true] %s25_s24 }
   0x5   :  { %s660_s25 = smov 128   ;;  %s661_s26 = smov 8  }
   0x6   :  { %48 = dma.hbm_to_vmem [thread:$0]  %s41_s19, 2048, %s43_s21, [#allocation7], %s660_s25, %s660_s25, %s661_s26  }
   0x7   :  { %s662_s27 = smov [#allocation3]   ;;  %s57_s2 = sshll.u32 %s795_s5, 4  ;;  %s58_s2 = int_to_ptr.hbm [resolvable:$true] %s57_s2 }
   0x8   :  { %s27_s28 = sshll.u32 %s662_s27, 4  ;;  %s663_s0 = smov [#allocation8]   ;;  %s28_s28 = int_to_ptr.vmem [resolvable:$true] %s27_s28 }
   0x9   :  { %33 = dma.hbm_to_vmem [thread:$0]  %s26_s24, 256, %s28_s28, [#allocation4], %s660_s25, %s660_s25, %s661_s26  }
   0xa   :  { %s59_s12 = sshll.u32 %s663_s0, 4  ;;  %s72_s15 = sshll.u32 %s797_s7, 4  ;;  %s60_s12 = int_to_ptr.vmem [resolvable:$true] %s59_s12  ;;  %s73_s15 = int_to_ptr.hbm [resolvable:$true] %s72_s15 }
   0xb   :  { %s664_s16 = smov 256   ;;  %s665_s17 = smov 16  }
   0xc   :  { %65 = dma.hbm_to_vmem [thread:$0]  %s58_s2, 4096, %s60_s12, [#allocation7], %s664_s16, %s664_s16, %s665_s17  }
   0xd   :  { %s666_s18 = smov [#allocation9]  }
   0xe   :  { %s74_s19 = sshll.u32 %s666_s18, 4  ;;  %s75_s19 = int_to_ptr.vmem [resolvable:$true] %s74_s19 }
   0xf   :  { %80 = dma.hbm_to_vmem [thread:$0]  %s73_s15, 4096, %s75_s19, [#allocation10], %s660_s25, %s660_s25, %s661_s26  }
  0x10   :  { %651 = dma.done.wait [#allocation4], 256  }
  0x11   :  { %652 = vsyncadd [#allocation4], 4294967040 }
  0x12   :  { %653 = dma.done.wait [#allocation7], 6144  }
  0x13   :  { %654 = vsyncadd [#allocation7], 4294961152 }
  0x14   :  { %655 = dma.done.wait [#allocation10], 4096  }
  0x15   :  { %656 = vsyncadd [#allocation10], 4294963200  ;;  %v120_v0 = vld [vmem:[#allocation6 + $0x78] sm:$0xff]  ;;  %v119_v1 = vld [vmem:[#allocation6 + $0x70] sm:$0xff]  ;;  %s669_s29 = smov [#allocation11]   ;;  %s467_s0 = sshll.u32 %s801_s11, 4  ;;  %s468_s0 = int_to_ptr.hbm [resolvable:$true] %s467_s0 }
  0x16   :  { %121 = vmatpush.msra.mxu0 %v120_v0  ;;  %v118_v2 = vld [vmem:[#allocation6 + $0x68] sm:$0xff]  ;;  %v244_v3 = vld [vmem:[#allocation8 + $0xf0] sm:$0xff]  ;;  %v242_v4 = vld [vmem:[#allocation8 + $0xe0] sm:$0xff] }
  0x17   :  { %252 = vmatpush.msra.mxu1 %v244_v3  ;;  %v245_v5 = vld [vmem:[#allocation8 + $0xf8] sm:$0xff]  ;;  %v117_v6 = vld [vmem:[#allocation6 + $0x60] sm:$0xff]  ;;  %v240_v7 = vld [vmem:[#allocation8 + $0xd0] sm:$0xff] }
  0x18   :  { %122 = vmatpush.msra.mxu0 %v119_v1  ;;  %275 = vmatpush.msra.mxu2 %v245_v5  ;;  %v243_v8 = vld [vmem:[#allocation8 + $0xe8] sm:$0xff]  ;;  %v241_v9 = vld [vmem:[#allocation8 + $0xd8] sm:$0xff]  ;;  %v238_v11 = vld [vmem:[#allocation8 + $0xc0] sm:$0xff] }
  0x19   :  { %253 = vmatpush.msra.mxu1 %v242_v4  ;;  %v116_v10 = vld [vmem:[#allocation6 + $0x58] sm:$0xff]  ;;  %v239_v12 = vld [vmem:[#allocation8 + $0xc8] sm:$0xff]  ;;  %v115_v13 = vld [vmem:[#allocation6 + $0x50] sm:$0xff] }
  0x1a   :  { %123 = vmatpush.msra.mxu0 %v118_v2  ;;  %276 = vmatpush.msra.mxu2 %v243_v8  ;;  %v236_v14 = vld [vmem:[#allocation8 + $0xb0] sm:$0xff]  ;;  %v237_v15 = vld [vmem:[#allocation8 + $0xb8] sm:$0xff]  ;;  %v114_v16 = vld [vmem:[#allocation6 + $0x48] sm:$0xff]  ;;  %v667_v2 = vmov 0  }
  0x1b   :  { %254 = vmatpush.msra.mxu1 %v240_v7  ;;  %v234_v17 = vld [vmem:[#allocation8 + $0xa0] sm:$0xff]  ;;  %v235_v18 = vld [vmem:[#allocation8 + $0xa8] sm:$0xff]  ;;  %v232_v20 = vld [vmem:[#allocation8 + $0x90] sm:$0xff]  ;;  %511 = vset.pattern.permute.xlu0 %v667_v2 }
  0x1c   :  { %124 = vmatpush.msra.mxu0 %v117_v6  ;;  %277 = vmatpush.msra.mxu2 %v241_v9  ;;  %v113_v19 = vld [vmem:[#allocation6 + $0x40] sm:$0xff]  ;;  %v233_v21 = vld [vmem:[#allocation8 + $0x98] sm:$0xff]  ;;  %v231_v24 = vld [vmem:[#allocation8 + $0x88] sm:$0xff] }
  0x1d   :  { %255 = vmatpush.msra.mxu1 %v238_v11  ;;  %v112_v22 = vld [vmem:[#allocation6 + $0x38] sm:$0xff]  ;;  %v230_v23 = vld [vmem:[#allocation8 + $0x80] sm:$0xff]  ;;  %v111_v25 = vld [vmem:[#allocation6 + $0x30] sm:$0xff] }
  0x1e   :  { %125 = vmatpush.msra.mxu0 %v116_v10  ;;  %278 = vmatpush.msra.mxu2 %v239_v12  ;;  %v228_v26 = vld [vmem:[#allocation8 + $0x70] sm:$0xff]  ;;  %v325_v27 = vld [vmem:[#allocation9 + $0x78] sm:$0xff]  ;;  %v110_v28 = vld [vmem:[#allocation6 + $0x28] sm:$0xff] }
  0x1f   :  { %256 = vmatpush.msra.mxu1 %v236_v14  ;;  %v229_v29 = vld [vmem:[#allocation8 + $0x78] sm:$0xff]  ;;  %v324_v30 = vld [vmem:[#allocation9 + $0x70] sm:$0xff]  ;;  %v109_v31 = vld [vmem:[#allocation6 + $0x20] sm:$0xff]  ;;  %346 = vmatpush.msra.mxu3 %v325_v27 }
  0x20   :  { %126 = vmatpush.msra.mxu0 %v115_v13  ;;  %279 = vmatpush.msra.mxu2 %v237_v15  ;;  %v226_v32 = vld [vmem:[#allocation8 + $0x60] sm:$0xff]  ;;  %v224_v33 = vld [vmem:[#allocation8 + $0x50] sm:$0xff]  ;;  %v227_v34 = vld [vmem:[#allocation8 + $0x68] sm:$0xff] }
  0x21   :  { %257 = vmatpush.msra.mxu1 %v234_v17  ;;  %v225_v35 = vld [vmem:[#allocation8 + $0x58] sm:$0xff]  ;;  %v323_v36 = vld [vmem:[#allocation9 + $0x68] sm:$0xff]  ;;  %347 = vmatpush.msra.mxu3 %v324_v30  ;;  %v322_v37 = vld [vmem:[#allocation9 + $0x60] sm:$0xff] }
  0x22   :  { %127 = vmatpush.msra.mxu0 %v114_v16  ;;  %280 = vmatpush.msra.mxu2 %v235_v18  ;;  %v108_v38 = vld [vmem:[#allocation6 + $0x18] sm:$0xff]  ;;  %v222_v39 = vld [vmem:[#allocation8 + $0x40] sm:$0xff]  ;;  %v223_v40 = vld [vmem:[#allocation8 + $0x48] sm:$0xff] }
  0x23   :  { %258 = vmatpush.msra.mxu1 %v232_v20  ;;  %348 = vmatpush.msra.mxu3 %v323_v36  ;;  %v321_v41 = vld [vmem:[#allocation9 + $0x58] sm:$0xff]  ;;  %v107_v42 = vld [vmem:[#allocation6 + $0x10] sm:$0xff]  ;;  %v106_v46 = vld [vmem:[#allocation6 + $0x8] sm:$0xff]  ;;  %v145_v20 = vstv %s791_s1 }
  0x24   :  { %128 = vmatpush.msra.mxu0 %v113_v19  ;;  %281 = vmatpush.msra.mxu2 %v233_v21  ;;  %v220_v43 = vld [vmem:[#allocation8 + $0x30] sm:$0xff]  ;;  %v221_v44 = vld [vmem:[#allocation8 + $0x38] sm:$0xff]  ;;  %v218_v47 = vld [vmem:[#allocation8 + $0x20] sm:$0xff] }
  0x25   :  { %259 = vmatpush.msra.mxu1 %v230_v23  ;;  %349 = vmatpush.msra.mxu3 %v322_v37  ;;  %v320_v45 = vld [vmem:[#allocation9 + $0x50] sm:$0xff]  ;;  %v219_v48 = vld [vmem:[#allocation8 + $0x28] sm:$0xff]  ;;  %v105_v50 = vld [vmem:[#allocation6] sm:$0xff] }
  0x26   :  { %129 = vmatpush.msra.mxu0 %v112_v22  ;;  %282 = vmatpush.msra.mxu2 %v231_v24  ;;  %v319_v49 = vld [vmem:[#allocation9 + $0x48] sm:$0xff]  ;;  %v216_v51 = vld [vmem:[#allocation8 + $0x10] sm:$0xff]  ;;  %v217_v53 = vld [vmem:[#allocation8 + $0x18] sm:$0xff] }
  0x27   :  { %260 = vmatpush.msra.mxu1 %v228_v26  ;;  %350 = vmatpush.msra.mxu3 %v321_v41  ;;  %v751_v52 = vld [vmem:[#allocation3] sm:$0xff]  ;;  %v214_v54 = vld [vmem:[#allocation8] sm:$0xff]  ;;  %v341_v55 = vld [vmem:[#allocation9 + $0xf8] sm:$0xff] }
  0x28   :  { %130 = vmatpush.msra.mxu0 %v111_v25  ;;  %283 = vmatpush.msra.mxu2 %v229_v29  ;;  %v215_v56 = vld [vmem:[#allocation8 + $0x8] sm:$0xff]  ;;  %v340_v57 = vld [vmem:[#allocation9 + $0xf0] sm:$0xff]  ;;  %v756_v59 = vld [vmem:[#allocation3 + $0x8] sm:$0xff] }
  0x29   :  { %261 = vmatpush.msra.mxu1 %v226_v32  ;;  %351 = vmatpush.msra.mxu3 %v320_v45  ;;  %v339_v58 = vld [vmem:[#allocation9 + $0xe8] sm:$0xff]  ;;  %v318_v60 = vld [vmem:[#allocation9 + $0x40] sm:$0xff]  ;;  %v317_v62 = vld [vmem:[#allocation9 + $0x38] sm:$0xff] }
  0x2a   :  { %131 = vmatpush.msra.mxu0 %v110_v28  ;;  %284 = vmatpush.msra.mxu2 %v227_v34  ;;  %v338_v61 = vld [vmem:[#allocation9 + $0xe0] sm:$0xff]  ;;  %v337_v63 = vld [vmem:[#allocation9 + $0xd8] sm:$0xff]  ;;  %v316_v0 = vld [vmem:[#allocation9 + $0x30] sm:$0xff] }
  0x2b   :  { %262 = vmatpush.msra.mxu1 %v224_v33  ;;  %352 = vmatpush.msra.mxu3 %v319_v49  ;;  %v336_v1 = vld [vmem:[#allocation9 + $0xd0] sm:$0xff]  ;;  %v315_v3 = vld [vmem:[#allocation9 + $0x28] sm:$0xff]  ;;  %v314_v5 = vld [vmem:[#allocation9 + $0x20] sm:$0xff] }
  0x2c   :  { %132 = vmatpush.msra.mxu0 %v109_v31  ;;  %285 = vmatpush.msra.mxu2 %v225_v35  ;;  %v335_v4 = vld [vmem:[#allocation9 + $0xc8] sm:$0xff]  ;;  %v334_v6 = vld [vmem:[#allocation9 + $0xc0] sm:$0xff]  ;;  %v313_v7 = vld [vmem:[#allocation9 + $0x18] sm:$0xff] }
  0x2d   :  { %263 = vmatpush.msra.mxu1 %v222_v39  ;;  %353 = vmatpush.msra.mxu3 %v318_v60  ;;  %v333_v8 = vld [vmem:[#allocation9 + $0xb8] sm:$0xff]  ;;  %v312_v9 = vld [vmem:[#allocation9 + $0x10] sm:$0xff]  ;;  %v311_v11 = vld [vmem:[#allocation9 + $0x8] sm:$0xff] }
  0x2e   :  { %133 = vmatpush.msra.mxu0 %v108_v38  ;;  %286 = vmatpush.msra.mxu2 %v223_v40  ;;  %v332_v10 = vld [vmem:[#allocation9 + $0xb0] sm:$0xff]  ;;  %v331_v12 = vld [vmem:[#allocation9 + $0xa8] sm:$0xff]  ;;  %v310_v13 = vld [vmem:[#allocation9] sm:$0xff] }
  0x2f   :  { %264 = vmatpush.msra.mxu1 %v220_v43  ;;  %354 = vmatpush.msra.mxu3 %v317_v62  ;;  %v330_v14 = vld [vmem:[#allocation9 + $0xa0] sm:$0xff]  ;;  %v329_v15 = vld [vmem:[#allocation9 + $0x98] sm:$0xff]  ;;  %v328_v16 = vld [vmem:[#allocation9 + $0x90] sm:$0xff] }
  0x30   :  { %134 = vmatpush.msra.mxu0 %v107_v42  ;;  %287 = vmatpush.msra.mxu2 %v221_v44  ;;  %v327_v17 = vld [vmem:[#allocation9 + $0x88] sm:$0xff]  ;;  %v326_v18 = vld [vmem:[#allocation9 + $0x80] sm:$0xff]  ;;  %v246_v19 = vld [vmem:[%s796_s6] sm:$0x3] }
  0x31   :  { %265 = vmatpush.msra.mxu1 %v218_v47  ;;  %355 = vmatpush.msra.mxu3 %v316_v0  ;;  %v248_v21 = vperm.slane %v246_v19, 0  ;;  %v249_v29 = vperm.slane %v246_v19, 1  ;;  %v512_v47 = vld [vmem:[%s793_s3] ss:$0 sm:$0xff] }
  0x32   :  { %135 = vmatpush.msra.mxu0 %v106_v46  ;;  %288 = vmatpush.msra.mxu2 %v219_v48  ;;  %v513_v48 = vld [vmem:[%s794_s4] ss:$0 sm:$0xff] }
  0x33   :  { %266 = vmatpush.msra.mxu1 %v216_v51  ;;  %356 = vmatpush.msra.mxu3 %v315_v3  ;;  %v514_v2 = vld [vmem:[%s798_s8] ss:$0 sm:$0xff] }
  0x34   :  { %136 = vmatpush.msra.mxu0 %v105_v50  ;;  %289 = vmatpush.msra.mxu2 %v217_v53 }
  0x35   :  { %137 = vmatmul.f32.vlgmr.msra.gmra.mxu0 %v751_v52  ;;  %267 = vmatpush.msra.mxu1 %v214_v54 }
  0x36   :  { %369 = vmatpush.msrb.mxu0 %v341_v55  ;;  %268 = vmatmul.f32.vlgmr.msra.gmra.mxu1 %v751_v52 }
  0x37   :  { %290 = vmatpush.msra.mxu2 %v215_v56  ;;  %484 = vmatpush.msrb.mxu1 %v341_v55 }
  0x38   :  { %291 = vmatmul.f32.vlgmr.msra.gmra.mxu2 %v751_v52  ;;  %370 = vmatpush.msrb.mxu0 %v340_v57 }
  0x39   :  { %485 = vmatpush.msrb.mxu1 %v340_v57  ;;  %357 = vmatpush.msra.mxu3 %v314_v5 }
  0x3a   :  { %371 = vmatpush.msrb.mxu0 %v339_v58 }
  0x3b   :  { %486 = vmatpush.msrb.mxu1 %v339_v58  ;;  %358 = vmatpush.msra.mxu3 %v313_v7 }
  0x3c   :  { %372 = vmatpush.msrb.mxu0 %v338_v61 }
  0x3d   :  { %140 = vmatmul.f32.gmra.mxu0 %v756_v59  ;;  %487 = vmatpush.msrb.mxu1 %v338_v61 }
  0x3e   :  { %271 = vmatmul.f32.gmra.mxu1 %v756_v59  ;;  %373 = vmatpush.msrb.mxu0 %v337_v63 }
  0x3f   :  { %488 = vmatpush.msrb.mxu1 %v337_v63  ;;  %359 = vmatpush.msra.mxu3 %v312_v9 }
  0x40   :  { %294 = vmatmul.f32.gmra.mxu2 %v756_v59  ;;  %374 = vmatpush.msrb.mxu0 %v336_v1 }
  0x41   :  { %489 = vmatpush.msrb.mxu1 %v336_v1  ;;  %360 = vmatpush.msra.mxu3 %v311_v11 }
  0x42   :  { %375 = vmatpush.msrb.mxu0 %v335_v4 }
  0x43   :  { %490 = vmatpush.msrb.mxu1 %v335_v4  ;;  %361 = vmatpush.msra.mxu3 %v310_v13 }
  0x44   :  { %376 = vmatpush.msrb.mxu0 %v334_v6 }
  0x45   :  { %491 = vmatpush.msrb.mxu1 %v334_v6 }
  0x46   :  { %377 = vmatpush.msrb.mxu0 %v333_v8 }
  0x47   :  { %492 = vmatpush.msrb.mxu1 %v333_v8 }
  0x48   :  { %378 = vmatpush.msrb.mxu0 %v332_v10 }
  0x49   :  { %493 = vmatpush.msrb.mxu1 %v332_v10 }
  0x4a   :  { %379 = vmatpush.msrb.mxu0 %v331_v12 }
  0x4b   :  { %494 = vmatpush.msrb.mxu1 %v331_v12 }
  0x4c   :  { %380 = vmatpush.msrb.mxu0 %v330_v14 }
  0x4d   :  { %495 = vmatpush.msrb.mxu1 %v330_v14 }
  0x4e   :  { %381 = vmatpush.msrb.mxu0 %v329_v15 }
  0x4f   :  { %496 = vmatpush.msrb.mxu1 %v329_v15 }
  0x50   :  { %382 = vmatpush.msrb.mxu0 %v328_v16 }
  0x51   :  { %497 = vmatpush.msrb.mxu1 %v328_v16 }
  0x52   :  { %383 = vmatpush.msrb.mxu0 %v327_v17 }
  0x53   :  { %498 = vmatpush.msrb.mxu1 %v327_v17 }
  0x54   :  { %384 = vmatpush.msrb.mxu0 %v326_v18 }
  0x55   :  { %499 = vmatpush.msrb.mxu1 %v326_v18 }
  0xb2   :  { %v138_v22 = vpop.f32.mrf.mxu0 }
  0xb3   :  { %v146_v23 = vadd.f32 %v145_v20, %v138_v22  ;;  %v269_v24 = vpop.f32.mrf.mxu1 }
  0xb4   :  { %v270_v26 = vadd.f32 %v269_v24, %v248_v21 }
  0xb5   :  { %vm148_vm0 = vcmp.gt.f32.partialorder %v146_v23, 0.0  ;;  %v150_v25 = vmul.f32 0.01, %v146_v23 }
  0xb6   :  { %vm298_vm1 = vcmp.gt.f32.partialorder %v270_v26, 0.0  ;;  %v302_v28 = vmul.f32 0.01, %v270_v26 }
  0xb7   :  { %v152_v27 = vsel %vm148_vm0, %v146_v23, %v150_v25 }
  0xb8   :  { %157 = vperm.xlu0 %511, %v152_v27   ;;  %v306_v30 = vsel %vm298_vm1, %v270_v26, %v302_v28 }
  0xb9   :  { %362 = vmatmul.f32.vlgmr.msra.gmra.mxu3 %v306_v30 }
  0xba   :  { %v141_v31 = vpop.f32.mrf.mxu0 }
  0xbb   :  { %v147_v32 = vadd.f32 %v145_v20, %v141_v31  ;;  %v292_v33 = vpop.f32.mrf.mxu2  ;;  %v272_v34 = vpop.f32.mrf.mxu1 }
  0xbc   :  { %v293_v35 = vadd.f32 %v292_v33, %v249_v29  ;;  %v273_v37 = vadd.f32 %v272_v34, %v248_v21 }
  0xbd   :  { %v151_v36 = vmul.f32 0.01, %v147_v32  ;;  %vm149_vm2 = vcmp.gt.f32.partialorder %v147_v32, 0.0 }
  0xbe   :  { %v303_v38 = vmul.f32 0.01, %v293_v35  ;;  %vm299_vm3 = vcmp.gt.f32.partialorder %v293_v35, 0.0  ;;  %vm300_vm4 = vcmp.gt.f32.partialorder %v273_v37, 0.0  ;;  %v304_v40 = vmul.f32 0.01, %v273_v37 }
  0xbf   :  { %v153_v39 = vsel %vm149_vm2, %v147_v32, %v151_v36  ;;  %v668_v36 = vmov 128.0  }
  0xc0   :  { %162 = vperm.xlu0 %511, %v153_v39   ;;  %v307_v41 = vsel %vm299_vm3, %v293_v35, %v303_v38  ;;  %v308_v42 = vsel %vm300_vm4, %v273_v37, %v304_v40 }
  0xc1   :  { %385 = vmatmul.f32.vlgmr.msrb.gmra.mxu0 %v307_v41  ;;  %365 = vmatmul.f32.gmra.mxu3 %v308_v42 }
  0xc3   :  { %v295_v43 = vpop.f32.mrf.mxu2 }
  0xc4   :  { %v296_v44 = vadd.f32 %v295_v43, %v249_v29 }
  0xc6   :  { %v305_v45 = vmul.f32 0.01, %v296_v44  ;;  %vm301_vm5 = vcmp.gt.f32.partialorder %v296_v44, 0.0 }
  0xc8   :  { %v309_v46 = vsel %vm301_vm5, %v296_v44, %v305_v45 }
  0xc9   :  { %388 = vmatmul.f32.vlgmr.msrb.gmra.mxu1 %v309_v46 }
 0x12a   :  { %v158_v49 = vpop.permute.xlu0 %157 }
 0x12b   :  { %v168_v50 = vmul.f32 %v512_v47, %v158_v49 }
 0x12d   :  { %v174_v51 = vadd.f32 %v513_v48, %v168_v50 }
 0x12f   :  { %v482_v53 = vmul.f32 -1.442695, %v174_v51 }
 0x131   :  { %517 = vpow2.f32 %v482_v53 }
 0x132   :  { %v163_v54 = vpop.permute.xlu0 %162 }
 0x133   :  { %v169_v55 = vmul.f32 %v512_v47, %v163_v54 }
 0x135   :  { %v175_v56 = vadd.f32 %v513_v48, %v169_v55 }
 0x137   :  { %v518_v57 = vpop.eup %517  ;;  %v483_v58 = vmul.f32 -1.442695, %v175_v56 }
 0x138   :  { %v182_v60 = vadd.f32 1.0, %v518_v57 }
 0x139   :  { %519 = vpow2.f32 %v483_v58 }
 0x13a   :  { %521 = vrcp.f32 %v182_v60  ;;  %v195_v4 = vand.u32 2147483648, %v182_v60  ;;  %v193_v6 = vand.u32 2147483647, %v182_v60  ;;  %vm189_vm7 = vweird.f32 %v182_v60 }
 0x13c   :  { %v363_v1 = vpop.f32.mrf.mxu3  ;;  %v196_v10 = vor.u32 1.1754944e-38, %v195_v4  ;;  %vm194_vm9 = vcmp.eq.f32.partialorder %v193_v6, 8.507059e+37 }
 0x13d   :  { %v364_v7 = vadd.f32 %v514_v2, %v363_v1  ;;  %v515_v1 = vld [vmem:[%s799_s9] ss:$0 sm:$0xff]  ;;  %s465_s9 = sshll.u32 %s669_s29, 4  ;;  %s466_s9 = int_to_ptr.vmem [resolvable:$true] %s465_s9 }
 0x13e   :  { %v386_v11 = vpop.f32.mrf.mxu0 }
 0x13f   :  { %v520_v61 = vpop.eup %519  ;;  %v387_v15 = vadd.f32 %v386_v11, %v364_v7 }
 0x140   :  { %v522_v62 = vpop.eup %521  ;;  %v183_v63 = vadd.f32 1.0, %v520_v61 }
 0x141   :  { %v185_v0 = vmul.f32 %v522_v62, %v182_v60  ;;  %vm190_vm6 = vweird.f32 %v522_v62 }
 0x142   :  { %523 = vrcp.f32 %v183_v63  ;;  %vm191_vm8 = vmor %vm189_vm7, %vm190_vm6  ;;  %v208_v19 = vand.u32 2147483647, %v183_v63  ;;  %v210_v20 = vand.u32 2147483648, %v183_v63  ;;  %vm204_vm11 = vweird.f32 %v183_v63 }
 0x143   :  { %v186_v3 = vsub.f32 1.0, %v185_v0  ;;  %525 = vrcp.f32 %v668_v36 }
 0x144   :  { %v366_v18 = vpop.f32.mrf.mxu3  ;;  %v211_v27 = vor.u32 1.1754944e-38, %v210_v20  ;;  %vm209_vm13 = vcmp.eq.f32.partialorder %v208_v19, 8.507059e+37 }
 0x145   :  { %v187_v5 = vmul.f32 %v522_v62, %v186_v3  ;;  %v367_v24 = vadd.f32 %v514_v2, %v366_v18 }
 0x146   :  { %v389_v28 = vpop.f32.mrf.mxu1 }
 0x147   :  { %v188_v8 = vadd.f32 %v522_v62, %v187_v5  ;;  %v390_v31 = vadd.f32 %v389_v28, %v367_v24  ;;  %v516_v5 = vld [vmem:[%s800_s10] ss:$0 sm:$0xff] }
 0x148   :  { %v524_v9 = vpop.eup %523 }
 0x149   :  { %v192_v12 = vsel %vm191_vm8, %v522_v62, %v188_v8  ;;  %v200_v13 = vmul.f32 %v524_v9, %v183_v63  ;;  %vm205_vm10 = vweird.f32 %v524_v9 }
 0x14a   :  { %v197_v14 = vsel %vm194_vm9, %v196_v10, %v192_v12  ;;  %vm206_vm12 = vmor %vm204_vm11, %vm205_vm10 }
 0x14b   :  { %v394_v16 = vsub.f32 1.0, %v197_v14  ;;  %v201_v17 = vsub.f32 1.0, %v200_v13  ;;  %v392_v23 = vmul.f32 %v197_v14, %v751_v52  ;;  %v526_v52 = vpop.eup %525 }
 0x14c   :  { %v405_v37 = vmul.f32 128.0, %v526_v52  ;;  %vm409_vm14 = vweird.f32 %v526_v52 }
 0x14d   :  { %v396_v21 = vmul.f32 %v394_v16, %v387_v15  ;;  %v202_v22 = vmul.f32 %v524_v9, %v201_v17 }
 0x14e   :  { %v406_v38 = vsub.f32 1.0, %v405_v37 }
 0x14f   :  { %v203_v25 = vadd.f32 %v524_v9, %v202_v22  ;;  %v398_v26 = vadd.f32 %v396_v21, %v392_v23 }
 0x150   :  { %v407_v39 = vmul.f32 %v526_v52, %v406_v38 }
 0x151   :  { %v207_v29 = vsel %vm206_vm12, %v524_v9, %v203_v25  ;;  %400 = vadd.xlane.f32.xlu1 %v398_v26 }
 0x152   :  { %v212_v30 = vsel %vm209_vm13, %v211_v27, %v207_v29  ;;  %v408_v40 = vadd.f32 %v526_v52, %v407_v39 }
 0x153   :  { %v395_v32 = vsub.f32 1.0, %v212_v30  ;;  %v393_v34 = vmul.f32 %v212_v30, %v756_v59 }
 0x154   :  { %v410_v41 = vsel %vm409_vm14, %v526_v52, %v408_v40 }
 0x155   :  { %v397_v33 = vmul.f32 %v395_v32, %v390_v31 }
 0x157   :  { %v399_v35 = vadd.f32 %v397_v33, %v393_v34 }
 0x159   :  { %402 = vadd.xlane.f32.xlu1 %v399_v35 }
 0x1c4   :  { %v401_v42 = vpop.xlane.xlu1 %400 }
 0x1c5   :  { %v411_v43 = vmul.f32 %v410_v41, %v401_v42 }
 0x1c7   :  { %v413_v44 = vsub.f32 %v398_v26, %v411_v43 }
 0x1c9   :  { %v415_v45 = vmul.f32 %v413_v44, %v413_v44 }
 0x1cb   :  { %417 = vadd.xlane.f32.xlu2 %v415_v45 }
 0x1cc   :  { %v403_v46 = vpop.xlane.xlu1 %402 }
 0x1cd   :  { %v412_v47 = vmul.f32 %v410_v41, %v403_v46 }
 0x1cf   :  { %v414_v48 = vsub.f32 %v399_v35, %v412_v47 }
 0x1d1   :  { %v416_v59 = vmul.f32 %v414_v48, %v414_v48 }
 0x1d3   :  { %419 = vadd.xlane.f32.xlu2 %v416_v59 }
 0x23e   :  { %v418_v49 = vpop.xlane.xlu2 %417 }
 0x23f   :  { %v421_v50 = vmul.f32 %v418_v49, %v410_v41 }
 0x241   :  { %v423_v51 = vadd.f32 1e-05, %v421_v50 }
 0x243   :  { %527 = vrsqrt.f32 %v423_v51  ;;  %vm431_vm0 = vweird.f32 %v423_v51 }
 0x246   :  { %v420_v53 = vpop.xlane.xlu2 %419 }
 0x247   :  { %v422_v54 = vmul.f32 %v420_v53, %v410_v41 }
 0x249   :  { %v528_v55 = vpop.eup %527  ;;  %v424_v56 = vadd.f32 1e-05, %v422_v54 }
 0x24a   :  { %v426_v57 = vmul.f32 %v528_v55, %v423_v51  ;;  %vm432_vm15 = vweird.f32 %v528_v55 }
 0x24b   :  { %529 = vrsqrt.f32 %v424_v56  ;;  %vm433_vm1 = vmor %vm431_vm0, %vm432_vm15  ;;  %vm441_vm3 = vweird.f32 %v424_v56 }
 0x24c   :  { %v427_v58 = vmul.f32 %v528_v55, %v426_v57 }
 0x24e   :  { %v428_v60 = vmul.f32 0.5, %v427_v58 }
 0x250   :  { %v429_v61 = vsub.f32 1.5, %v428_v60 }
 0x251   :  { %v530_v62 = vpop.eup %529 }
 0x252   :  { %v430_v63 = vmul.f32 %v528_v55, %v429_v61  ;;  %v436_v0 = vmul.f32 %v530_v62, %v424_v56  ;;  %vm442_vm2 = vweird.f32 %v530_v62 }
 0x253   :  { %vm443_vm4 = vmor %vm441_vm3, %vm442_vm2 }
 0x254   :  { %v434_v2 = vsel %vm433_vm1, %v528_v55, %v430_v63  ;;  %v437_v3 = vmul.f32 %v530_v62, %v436_v0 }
 0x255   :  { %v445_v4 = vmul.f32 %v434_v2, %v413_v44 }
 0x256   :  { %v438_v6 = vmul.f32 0.5, %v437_v3 }
 0x257   :  { %v451_v7 = vmul.f32 %v515_v1, %v445_v4 }
 0x258   :  { %v439_v8 = vsub.f32 1.5, %v438_v6 }
 0x259   :  { %v457_v9 = vadd.f32 %v516_v5, %v451_v7 }
 0x25a   :  { %v440_v10 = vmul.f32 %v530_v62, %v439_v8 }
 0x25b   :  { %459 = vst [vmem:[#allocation11] sm:$0xff] %v457_v9 }
 0x25c   :  { %v444_v11 = vsel %vm443_vm4, %v530_v62, %v440_v10 }
 0x25d   :  { %v446_v12 = vmul.f32 %v444_v11, %v414_v48 }
 0x25f   :  { %v452_v13 = vmul.f32 %v515_v1, %v446_v12 }
 0x261   :  { %v458_v14 = vadd.f32 %v516_v5, %v452_v13 }
 0x263   :  { %460 = vst [vmem:[#allocation11 + $0x8] sm:$0xff] %v458_v14 }
 0x264   :  { %473 = dma.vmem_to_hbm [thread:$0]  %s466_s9, 256, %s468_s0, [#allocation5], %s660_s25, %s660_s25, %s661_s26  }
 0x265   :  { %657 = dma.done.wait [#allocation5], 256  }
 0x266   :  { %658 = vsyncadd [#allocation5], 4294967040 }
 0x267   :  { %478 = vsyncpa [#allocation4], 1 }
 0x268   :  { %479 = vsyncpa [#allocation7], 1 }
 0x269   :  { %480 = vsyncpa [#allocation10], 1 }
 0x26a   :  { %481 = vsyncpa [#allocation5], 1 }

</bundles_post_ra>
